<compile_context>
chip_gen: v6e
topology: v6e:2x2x1
jax: 0.10.0
libtpu: 0.0.40
codegen_flags: <defaults>
</compile_context>

<pallas_src>
import functools

import jax
import jax.numpy as jnp
from jax.experimental import pallas as pl
from jax.experimental.pallas import tpu as pltpu


def _chip_profile():
    """Best-effort TPU-generation probe (trace time only)."""
    kind = ""
    try:
        kind = jax.devices()[0].device_kind.lower()
    except Exception:
        pass
    vmem_cap = None
    try:
        vmem_cap = int(pltpu.get_tpu_info().vmem_capacity_bytes)
    except Exception:
        vmem_cap = None
    is_v7 = "v7" in kind
    if vmem_cap is None or vmem_cap <= 0:
        vmem_cap = (64 << 20) if is_v7 else (128 << 20)
    # bf16 VALU on v6e/v7x; older generations (<= v5) lack it.
    has_bf16_valu = not any(g in kind for g in ("v2", "v3", "v4", "v5"))
    num_tc = 2 if is_v7 else 1
    return vmem_cap, has_bf16_valu, num_tc


def _rmsnorm_kernel(x_ref, w_ref, o_ref, *, eps, f32_scale):
    # x_ref: (TILE_ROWS, D), w_ref: (1, D), o_ref: (TILE_ROWS, D)
    x = x_ref[...]
    xf = x.astype(jnp.float32)
    # Mean of squares along the last (lane) axis: strictly per-row, so garbage
    # rows of a partial final block cannot contaminate valid rows (their
    # writes are masked by Pallas).
    ms = jnp.mean(xf * xf, axis=-1, keepdims=True)
    inv_rms = jax.lax.rsqrt(ms + eps)          # EUP; off the VPU critical path
    w = w_ref[...]                             # pre-cast in wrapper; broadcasts
    if f32_scale:
        # f32 path (f32 IO, or chips without bf16 VALU, e.g. v5e).
        o_ref[...] = ((xf * w) * inv_rms).astype(o_ref.dtype)
    else:
        # bf16 VALU path (v6e/v7x): keep the scale chain in the IO dtype;
        # only the reduction above ran in f32.
        o_ref[...] = ((x * w) * inv_rms.astype(x.dtype)).astype(o_ref.dtype)


def _choose_tile_rows(n_rows, dim, io_bytes, *, budget, num_tc, n_in_bufs,
                      temp_bytes):
    """Pick the biggest sublane-aligned row tile fitting the VMEM budget."""
    row_align = 8 if io_bytes >= 4 else (16 if io_bytes == 2 else 32)
    # Per-row VMEM bytes: n_in_bufs input buffers + 2 output buffers in the IO
    # dtype, plus in-kernel temporaries (f32 or mixed, per scaling path).
    per_row = dim * ((n_in_bufs + 2) * io_bytes + temp_bytes)
    tile = max(row_align, (budget // per_row) // row_align * row_align)
    tile = min(tile, 1024)
    rows_aligned = -(-n_rows // row_align) * row_align
    tile = min(tile, rows_aligned)
    # v7x (2 TensorCores): keep >= 2 steps per core for large inputs so
    # double-buffering survives the megacore split. 1-TC chips skip this
    # (forcing a split there is pure per-step overhead).
    if num_tc > 1:
        min_steps = 2 * num_tc
        big_enough = n_rows * dim * io_bytes >= (1 << 20)
        if big_enough and n_rows >= min_steps * row_align:
            per_step = -(-n_rows // min_steps)
            per_step = -(-per_step // row_align) * row_align
            tile = min(tile, max(row_align, per_step))
    return tile


def rmsnorm(x, weight, eps=1e-8, *, tile_rows=None):
    """RMSNorm over the last axis of x, scaled by `weight` (shape (dim,))."""
    orig_shape = x.shape
    dim = orig_shape[-1]
    assert weight.shape == (dim,)
    # NOTE: lane-dense output (dim % 128 == 0) gives unmasked vst; smaller /
    # odd dims still work correctly but hit the masked partial-store path.

    # Flatten leading dims into rows (metadata-only reshape, no HBM copy).
    x2 = x.reshape(-1, dim)
    n_rows = x2.shape[0]
    io_bytes = jnp.dtype(x.dtype).itemsize

    vmem_cap, has_bf16_valu, num_tc = _chip_profile()
    f32_scale = (io_bytes >= 4) or (not has_bf16_valu)
    temp_bytes = 8 if f32_scale else 6

    # Generation-aware budget / limit: ~0.75x chip VMEM, never above 100 MiB.
    cap_limit = min(int(0.75 * vmem_cap), 100 * 1024 * 1024)
    budget = cap_limit - (4 << 20)

    # Deeper input pipeline on multi-TC (v7x): a 3rd buffer hides DMA issue
    # latency that is relatively more expensive at 3.2 TB/s HBM.
    deep_pipeline = (num_tc > 1) and hasattr(pl, "Buffered")
    n_in_bufs = 3 if deep_pipeline else 2

    if tile_rows is None:
        tile_rows = _choose_tile_rows(
            n_rows, dim, io_bytes, budget=budget, num_tc=num_tc,
            n_in_bufs=n_in_bufs, temp_bytes=temp_bytes)

    grid_steps = pl.cdiv(n_rows, tile_rows)
    use_buffered = deep_pipeline and grid_steps >= 3

    # Hoisted weight cast: weight is only D elements, cast once in HBM.
    w_dtype = jnp.float32 if f32_scale else x.dtype
    w2 = weight.astype(w_dtype).reshape(1, dim)

    # vmem_limit just above the actual per-step footprint (plus small margin).
    footprint = (tile_rows * dim * ((n_in_bufs + 2) * io_bytes + temp_bytes)
                 + 2 * dim * jnp.dtype(w_dtype).itemsize)
    vmem_limit = int(min(max(footprint + (4 << 20), 32 << 20), cap_limit))

    x_spec_kwargs = {}
    if use_buffered:
        x_spec_kwargs["pipeline_mode"] = pl.Buffered(3)
    x_spec = pl.BlockSpec((tile_rows, dim), lambda i: (i, 0), **x_spec_kwargs)

    cost = pl.CostEstimate(
        flops=4 * n_rows * dim + n_rows,
        transcendentals=n_rows,
        bytes_accessed=2 * n_rows * dim * io_bytes
        + dim * jnp.dtype(w_dtype).itemsize,
    )

    out = pl.pallas_call(
        functools.partial(_rmsnorm_kernel, eps=eps, f32_scale=f32_scale),
        out_shape=jax.ShapeDtypeStruct((n_rows, dim), x.dtype),
        grid_spec=pltpu.PrefetchScalarGridSpec(
            num_scalar_prefetch=0,
            grid=(grid_steps,),
            in_specs=[
                x_spec,
                # Constant index_map -> weight stays VMEM-resident, no re-DMA.
                pl.BlockSpec((1, dim), lambda i: (0, 0)),
            ],
            out_specs=pl.BlockSpec((tile_rows, dim), lambda i: (i, 0)),
        ),
        compiler_params=pltpu.CompilerParams(
            dimension_semantics=("parallel",),
            vmem_limit_bytes=vmem_limit,
        ),
        cost_estimate=cost,
    )(x2, w2)

    return out.reshape(orig_shape)


if __name__ == "__main__":
    key = jax.random.PRNGKey(0)
    batch, seq, hidden = 2, 8, 128  # lane-dense hidden (dim % 128 == 0)

    x = jax.random.normal(key, (batch, seq, hidden), dtype=jnp.float32)
    # Matches torch.nn.Parameter(torch.ones(dim)) init in the module.
    weight = jnp.ones((hidden,), dtype=jnp.float32)
    eps = 1e-8  # module default

    out = jax.block_until_ready(rmsnorm(x, weight, eps))
    rms = jnp.sqrt(jnp.mean(x * x, axis=-1, keepdims=True) + eps)
    ref = x / rms * weight
    assert out.shape == x.shape and out.dtype == x.dtype
    assert jnp.allclose(out, ref, atol=1e-5, rtol=1e-5)

    # Regression: bf16 IO, row count (15) not a multiple of the bf16 sublane
    # alignment (16) and a non-lane-dense hidden (32) -> exercises the padless
    # partial-block path and the bf16 scaling path on v6e/v7x.
    xb = jax.random.normal(jax.random.PRNGKey(1), (3, 5, 32), dtype=jnp.bfloat16)
    wb = (jnp.ones((32,), dtype=jnp.float32)
          + 0.1 * jax.random.normal(jax.random.PRNGKey(2), (32,), jnp.float32))
    outb = jax.block_until_ready(rmsnorm(xb, wb, eps))
    xf = xb.astype(jnp.float32)
    refb = xf / jnp.sqrt(jnp.mean(xf * xf, axis=-1, keepdims=True) + eps) * wb
    assert outb.shape == xb.shape and outb.dtype == xb.dtype
    assert jnp.allclose(outb.astype(jnp.float32), refb, atol=5e-2, rtol=5e-2)

    print("KERNEL_OK")
</pallas_src>

<mosaic_0001>
module attributes {stable_mosaic.version = 11 : i64} {
  func.func @_rmsnorm_kernel(%arg0: i32, %arg1: memref<16x128xf32, #tpu.memory_space<vmem>>, %arg2: memref<1x128xf32, #tpu.memory_space<vmem>>, %arg3: memref<16x128xf32, #tpu.memory_space<vmem>>) attributes {dimension_semantics = [#tpu.dimension_semantics<parallel>], iteration_bounds = array<i64: 1>, scalar_prefetch = 0 : i64, scratch_operands = 0 : i64, tpu.core_type = #tpu.core_type<tc>, window_params = [{transform_indices = @transform_0, window_bounds = array<i64: 16, 128>}, {pipeline_mode = #tpu.pipeline_mode<synchronous>, transform_indices = @transform_1, window_bounds = array<i64: 1, 128>}, {transform_indices = @transform_2, window_bounds = array<i64: 16, 128>}]} {
    %c0 = arith.constant 0 : index
    %c0_0 = arith.constant 0 : index
    %0 = vector.load %arg1[%c0, %c0_0] : memref<16x128xf32, #tpu.memory_space<vmem>>, vector<16x128xf32>
    %1 = arith.mulf %0, %0 : vector<16x128xf32>
    %cst = arith.constant dense<0.000000e+00> : vector<16xf32>
    %2 = vector.multi_reduction <add>, %1, %cst [1] : vector<16x128xf32> to vector<16xf32>
    %3 = vector.shape_cast %2 : vector<16xf32> to vector<16x1xf32>
    %cst_1 = arith.constant 1.280000e+02 : f32
    %4 = vector.broadcast %cst_1 : f32 to vector<16x1xf32>
    %5 = arith.divf %3, %4 : vector<16x1xf32>
    %cst_2 = arith.constant 9.99999993E-9 : f32
    %6 = vector.broadcast %cst_2 : f32 to vector<16x1xf32>
    %7 = arith.addf %5, %6 : vector<16x1xf32>
    %8 = math.rsqrt %7 : vector<16x1xf32>
    %c0_3 = arith.constant 0 : index
    %c0_4 = arith.constant 0 : index
    %9 = vector.load %arg2[%c0_3, %c0_4] : memref<1x128xf32, #tpu.memory_space<vmem>>, vector<1x128xf32>
    %10 = vector.broadcast %9 : vector<1x128xf32> to vector<16x128xf32>
    %11 = arith.mulf %0, %10 : vector<16x128xf32>
    %12 = vector.broadcast %8 : vector<16x1xf32> to vector<16x128xf32>
    %13 = arith.mulf %11, %12 : vector<16x128xf32>
    %c0_5 = arith.constant 0 : index
    %c0_6 = arith.constant 0 : index
    %14 = vector.load %arg3[%c0_5, %c0_6] : memref<16x128xf32, #tpu.memory_space<vmem>>, vector<16x128xf32>
    tpu.vector_store %arg3[%c0_5, %c0_6], %13 {strides = array<i32>} : memref<16x128xf32, #tpu.memory_space<vmem>>, vector<16x128xf32>,
    return
  }
  func.func @transform_0(%arg0: i32) -> (i32, i32) {
    %c0_i32 = arith.constant 0 : i32
    %c0_i32_0 = arith.constant 0 : i32
    return %arg0, %c0_i32 : i32, i32
  }
  func.func @transform_1(%arg0: i32) -> (i32, i32) {
    %c0_i32 = arith.constant 0 : i32
    %c0_i32_0 = arith.constant 0 : i32
    %c0_i32_1 = arith.constant 0 : i32
    return %c0_i32, %c0_i32_0 : i32, i32
  }
  func.func @transform_2(%arg0: i32) -> (i32, i32) {
    %c0_i32 = arith.constant 0 : i32
    %c0_i32_0 = arith.constant 0 : i32
    return %arg0, %c0_i32 : i32, i32
  }
}

</mosaic_0001>

<bundles_post_ra>
// kernel: tpu_custom_call.1
= control target key start
LH: loop header
LB: loop body
LE: loop exit
PB: predicated region body
PF: predicated region fallthrough
CT: control target
= control target key end

     0   :  { %7 = vsyncpa [#allocation3], 0  ;;  %s158_s0 = inlined_call_operand.hbm [shape: f32[16,128], index: 0, kind: input, shape index: {}]   ;;  %s159_s1 = inlined_call_operand.vmem [shape: f32[1,128], index: 1, kind: input, shape index: {}]   ;;  %s160_s2 = inlined_call_operand.hbm [shape: f32[16,128], index: 2, kind: output, shape index: {}]  }
   0x1   :  { %8 = vsyncpa [#allocation4], 0  ;;  %s124_s9 = smov [#allocation2]  }
   0x2   :  { %s14_s10 = sshll.u32 %s124_s9, 4  ;;  %s15_s10 = int_to_ptr.vmem [resolvable:$true] %s14_s10 }
   0x3   :  { %s88_s11 = scalar_lea.vmem %s15_s10, 256  ;;  %p93_p1 = scmp.lt.s32.totalorder %s15_s10, %s15_s10 }
   0x4   :  { %p89_p0 = scmp.ne.s32.totalorder %s15_s10, %s88_s11  ;;  %p94_p2 = scmp.lt.s32.totalorder %s88_s11, %s88_s11 }
   0x6   :  { %p95_p3 = por %p94_p2, %p93_p1 }
   0x8   :  { %p96_p4 = pnand %p95_p3, %p89_p0 }
   0xa   :  { %99 = shalt.err (!%p96_p4)
}
   0xb   :  { %s125_s12 = smov 128   ;;  %s126_s13 = smov 8  }
   0xc   :  { %20 = dma.hbm_to_vmem [thread:$0]  %s158_s0, 256, %s15_s10, [#allocation3], %s125_s12, %s125_s12, %s126_s13  }
   0xd   :  { %120 = dma.done.wait [#allocation3], 256  }
   0xe   :  { %121 = vsyncadd [#allocation3], 4294967040  ;;  %v26_v0 = vld [vmem:[#allocation2] sm:$0xff]  ;;  %v27_v1 = vld [vmem:[#allocation2 + $0x8] sm:$0xff]  ;;  %s127_s0 = smov [#allocation5]  }
   0xf   :  { %v28_v2 = vmul.f32 %v26_v0, %v26_v0  ;;  %v29_v3 = vmul.f32 %v27_v1, %v27_v1  ;;  %v71_v10 = vld [vmem:[%s159_s1] ss:$0 sm:$0xff]  ;;  %s59_s18 = sshll.u32 %s127_s0, 4  ;;  %s60_s18 = int_to_ptr.vmem [resolvable:$true] %s59_s18 }
  0x10   :  { %v48_v11 = vmul.f32 %v71_v10, %v26_v0  ;;  %v49_v13 = vmul.f32 %v71_v10, %v27_v1  ;;  %s100_s19 = scalar_lea.vmem %s60_s18, 256  ;;  %p105_p6 = scmp.lt.s32.totalorder %s60_s18, %s60_s18 }
  0x11   :  { %30 = vadd.xlane.f32.xlu0 %v28_v2  ;;  %p101_p5 = scmp.ne.s32.totalorder %s60_s18, %s100_s19  ;;  %p106_p7 = scmp.lt.s32.totalorder %s100_s19, %s100_s19 }
  0x13   :  { %p107_p8 = por %p106_p7, %p105_p6 }
  0x15   :  { %32 = vadd.xlane.f32.xlu0 %v29_v3  ;;  %p108_p9 = pnand %p107_p8, %p101_p5 }
  0x9a   :  { %v31_v4 = vpop.xlane.xlu0 %30 }
  0x9b   :  { %v35_v5 = vmul.f32 0.0078125, %v31_v4 }
  0x9d   :  { %v37_v6 = vadd.f32 1e-08, %v35_v5 }
  0x9e   :  { %v33_v7 = vpop.xlane.xlu0 %32 }
  0x9f   :  { %76 = vrsqrt.f32 %v37_v6  ;;  %v36_v8 = vmul.f32 0.0078125, %v33_v7 }
  0xa1   :  { %v38_v9 = vadd.f32 1e-08, %v36_v8 }
  0xa3   :  { %78 = vrsqrt.f32 %v38_v9 }
  0xac   :  { %v77_v12 = vpop.eup %76 }
  0xad   :  { %v50_v14 = vmul.f32 %v77_v12, %v48_v11 }
  0xaf   :  { %52 = vst [vmem:[#allocation5] sm:$0xff] %v50_v14 }
  0xb0   :  { %v79_v15 = vpop.eup %78 }
  0xb1   :  { %v51_v16 = vmul.f32 %v79_v15, %v49_v13 }
  0xb3   :  { %53 = vst [vmem:[#allocation5 + $0x8] sm:$0xff] %v51_v16 }
  0xb4   :  { %111 = shalt.err (!%p108_p9)
}
  0xb5   :  { %65 = dma.vmem_to_hbm [thread:$0]  %s60_s18, 256, %s160_s2, [#allocation4], %s125_s12, %s125_s12, %s126_s13  }
  0xb6   :  { %122 = dma.done.wait [#allocation4], 256  }
  0xb7   :  { %123 = vsyncadd [#allocation4], 4294967040 }
  0xb8   :  { %69 = vsyncpa [#allocation3], 1 }
  0xb9   :  { %70 = vsyncpa [#allocation4], 1 }

</bundles_post_ra>
